<compile_context>
chip_gen: v5e
topology: v5e:2x2
jax: 0.10.0
libtpu: 0.0.40
codegen_flags: <defaults>
</compile_context>

<pallas_src>
import functools

import jax
import jax.numpy as jnp
from jax import lax
from jax.experimental import pallas as pl
from jax.experimental.pallas import tpu as pltpu


def lstm_fc_kernel(x_ref, w_ih_ref, w_hh_ref, b_ref, w_fc_ref, b_fc_ref,
                   out_ref, xproj_scr):
    """Single-invocation kernel: full sequence + weights resident in VMEM.

    x_ref     : (T*Bp, I)   time-major input, batch padded to Bp, flattened
    w_ih_ref  : (I, 4H)     input->gates  (pre-transposed)
    w_hh_ref  : (H, 4H)     hidden->gates (pre-transposed)
    b_ref     : (1, 4H)     combined bias (b_ih + b_hh)
    w_fc_ref  : (H, Op)     fc weight (pre-transposed, lane-padded)
    b_fc_ref  : (1, Op)     fc bias (lane-padded)
    out_ref   : (Bp, Op)    fc(last hidden state), padded
    xproj_scr : (T*Bp, 4H)  hoisted input projection (VMEM)
    """
    Bp = out_ref.shape[0]
    H = w_hh_ref.shape[0]
    T = x_ref.shape[0] // Bp

    # ---- Hoisted input projection + bias: one MXU call for all timesteps ----
    xproj_scr[...] = (jnp.dot(x_ref[...], w_ih_ref[...],
                              preferred_element_type=jnp.float32)
                      + b_ref[...])                                # (T*Bp, 4H)

    # Recurrent weight loaded into vregs once; constant over the recurrence.
    w_hh = w_hh_ref[...]                                           # (H, 4H)

    h0 = jnp.zeros((Bp, H), jnp.float32)
    c0 = jnp.zeros((Bp, H), jnp.float32)

    def step(t, carry):
        h, c = carry                                               # vreg-resident
        off = pl.multiple_of(t * Bp, 8)                            # sublane-aligned
        gates = (xproj_scr[pl.ds(off, Bp), :]
                 + jnp.dot(h, w_hh,
                           preferred_element_type=jnp.float32))    # (Bp, 4H)
        # Full-vreg EUP ops; slice the RESULTS (PyTorch gate order i, f, g, o).
        sig = jax.nn.sigmoid(gates)
        tnh = jnp.tanh(gates)
        i_g = sig[:, 0 * H:1 * H]
        f_g = sig[:, 1 * H:2 * H]
        g_g = tnh[:, 2 * H:3 * H]
        o_g = sig[:, 3 * H:4 * H]
        c_new = f_g * c + i_g * g_g
        h_new = o_g * jnp.tanh(c_new)
        return (h_new, c_new)

    # Small static T: full unroll so adjacent steps co-issue; cap the unroll
    # factor for larger T to avoid vreg spill on the serial chain.
    h_T, _ = lax.fori_loop(0, T, step, (h0, c0), unroll=min(T, 8))

    # fc applied to the last timestep's hidden state (== out[:, -1, :]).
    out_ref[...] = (jnp.dot(h_T, w_fc_ref[...],
                            preferred_element_type=jnp.float32)
                    + b_fc_ref[...])


@functools.partial(jax.jit)
def neural_network_forward(x, params):
    """x: (B, T, I) batch_first, float32.  Returns (B, predict_dim*lookahead)."""
    w_ih, w_hh, b_ih, b_hh, w_fc, b_fc = params
    B, T, I = x.shape
    H = w_hh.shape[1]
    O = w_fc.shape[0]

    Bp = ((B + 7) // 8) * 8          # pad batch to a sublane multiple
    Op = ((O + 127) // 128) * 128    # pad fc output to full lane width

    # Time-major, batch-padded, flattened to (T*Bp, I): the hoisted input
    # projection is one matmul and no in-kernel reshape is needed.
    # (jitted: transpose/pad/reshape fuse into one copy.)
    x_tm = jnp.transpose(x, (1, 0, 2)).astype(jnp.float32)            # (T, B, I)
    x_tm = jnp.pad(x_tm, ((0, 0), (0, Bp - B), (0, 0)))               # (T, Bp, I)
    x_flat = x_tm.reshape(T * Bp, I)

    w_ih_t = w_ih.T.astype(jnp.float32)                               # (I, 4H)
    w_hh_t = w_hh.T.astype(jnp.float32)                               # (H, 4H)
    b_comb = (b_ih + b_hh)[None, :].astype(jnp.float32)               # (1, 4H)
    w_fc_t = jnp.pad(w_fc.T.astype(jnp.float32),
                     ((0, 0), (0, Op - O)))                           # (H, Op)
    b_fc_p = jnp.pad(b_fc.astype(jnp.float32), (0, Op - O))[None, :]  # (1, Op)

    out_p = pl.pallas_call(
        lstm_fc_kernel,
        out_shape=jax.ShapeDtypeStruct((Bp, Op), jnp.float32),
        in_specs=[pl.BlockSpec(memory_space=pltpu.MemorySpace.VMEM)] * 6,
        out_specs=pl.BlockSpec(memory_space=pltpu.MemorySpace.VMEM),
        scratch_shapes=[pltpu.VMEM((T * Bp, 4 * H), jnp.float32)],
    )(x_flat, w_ih_t, w_hh_t, b_comb, w_fc_t, b_fc_p)

    return out_p[:B, :O]


def reference_forward(x, params):
    """Pure-JAX reference reproducing torch.nn.LSTM + Linear semantics."""
    w_ih, w_hh, b_ih, b_hh, w_fc, b_fc = params
    B, T, I = x.shape
    H = w_hh.shape[1]
    h0 = jnp.zeros((B, H), jnp.float32)
    c0 = jnp.zeros((B, H), jnp.float32)

    def step(carry, x_t):
        h, c = carry
        gates = x_t @ w_ih.T + h @ w_hh.T + b_ih + b_hh
        i_g = jax.nn.sigmoid(gates[:, 0 * H:1 * H])
        f_g = jax.nn.sigmoid(gates[:, 1 * H:2 * H])
        g_g = jnp.tanh(gates[:, 2 * H:3 * H])
        o_g = jax.nn.sigmoid(gates[:, 3 * H:4 * H])
        c = f_g * c + i_g * g_g
        h = o_g * jnp.tanh(c)
        return (h, c), None

    (h_T, _), _ = lax.scan(step, (h0, c0), jnp.transpose(x, (1, 0, 2)))
    return h_T @ w_fc.T + b_fc


def init_params(key, input_size, hidden_size, predict_dim, lookahead):
    """Deterministic init mirroring PyTorch's U(-1/sqrt(H), 1/sqrt(H))."""
    k = 1.0 / jnp.sqrt(hidden_size)
    ks = jax.random.split(key, 6)
    out_dim = predict_dim * lookahead
    w_ih = jax.random.uniform(ks[0], (4 * hidden_size, input_size),
                              jnp.float32, -k, k)
    w_hh = jax.random.uniform(ks[1], (4 * hidden_size, hidden_size),
                              jnp.float32, -k, k)
    b_ih = jax.random.uniform(ks[2], (4 * hidden_size,), jnp.float32, -k, k)
    b_hh = jax.random.uniform(ks[3], (4 * hidden_size,), jnp.float32, -k, k)
    w_fc = jax.random.uniform(ks[4], (out_dim, hidden_size),
                              jnp.float32, -k, k)
    b_fc = jax.random.uniform(ks[5], (out_dim,), jnp.float32, -k, k)
    return (w_ih, w_hh, b_ih, b_hh, w_fc, b_fc)


if __name__ == "__main__":
    # Small shapes implied by the module's forward:
    batch, seq, input_size = 2, 8, 4
    hidden_size, lookahead, predict_dim = 32, 2, 3

    key = jax.random.PRNGKey(0)
    k_x, k_p = jax.random.split(key)
    x = jax.random.normal(k_x, (batch, seq, input_size), jnp.float32)
    params = init_params(k_p, input_size, hidden_size, predict_dim, lookahead)

    out = neural_network_forward(x, params)
    out = jax.block_until_ready(out)

    ref = reference_forward(x, params)
    assert out.shape == (batch, predict_dim * lookahead)
    assert jnp.allclose(out, ref, atol=1e-5, rtol=1e-5), (
        f"max err {jnp.max(jnp.abs(out - ref))}")

    print("KERNEL_OK")
</pallas_src>

<mosaic_0001>
module attributes {stable_mosaic.version = 11 : i64} {
  func.func @lstm_fc_kernel(%arg0: memref<64x4xf32, #tpu.memory_space<vmem>>, %arg1: memref<4x128xf32, #tpu.memory_space<vmem>>, %arg2: memref<32x128xf32, #tpu.memory_space<vmem>>, %arg3: memref<1x128xf32, #tpu.memory_space<vmem>>, %arg4: memref<32x128xf32, #tpu.memory_space<vmem>>, %arg5: memref<1x128xf32, #tpu.memory_space<vmem>>, %arg6: memref<8x128xf32, #tpu.memory_space<vmem>>, %arg7: memref<64x128xf32, #tpu.memory_space<vmem>>) attributes {dimension_semantics = [], scalar_prefetch = 0 : i64, scratch_operands = 1 : i64, tpu.core_type = #tpu.core_type<tc>} {
    %c0 = arith.constant 0 : index
    %c0_0 = arith.constant 0 : index
    %0 = vector.load %arg0[%c0, %c0_0] : memref<64x4xf32, #tpu.memory_space<vmem>>, vector<64x4xf32>
    %c0_1 = arith.constant 0 : index
    %c0_2 = arith.constant 0 : index
    %1 = vector.load %arg1[%c0_1, %c0_2] : memref<4x128xf32, #tpu.memory_space<vmem>>, vector<4x128xf32>
    %cst = arith.constant dense<0.000000e+00> : vector<64x128xf32>
    %2 = tpu.matmul %0, %1, %cst {dimension_numbers = #tpu.dot_dimension_numbers<[1], [0], [0], [1], [0, 0, 1, 1], [], []>} : vector<64x4xf32>, vector<4x128xf32>, vector<64x128xf32> -> vector<64x128xf32>
    %c0_3 = arith.constant 0 : index
    %c0_4 = arith.constant 0 : index
    %3 = vector.load %arg3[%c0_3, %c0_4] : memref<1x128xf32, #tpu.memory_space<vmem>>, vector<1x128xf32>
    %4 = vector.broadcast %3 : vector<1x128xf32> to vector<64x128xf32>
    %5 = arith.addf %2, %4 : vector<64x128xf32>
    %c0_5 = arith.constant 0 : index
    %c0_6 = arith.constant 0 : index
    %6 = vector.load %arg7[%c0_5, %c0_6] : memref<64x128xf32, #tpu.memory_space<vmem>>, vector<64x128xf32>
    tpu.vector_store %arg7[%c0_5, %c0_6], %5 {strides = array<i32>} : memref<64x128xf32, #tpu.memory_space<vmem>>, vector<64x128xf32>,
    %c0_7 = arith.constant 0 : index
    %c0_8 = arith.constant 0 : index
    %7 = vector.load %arg2[%c0_7, %c0_8] : memref<32x128xf32, #tpu.memory_space<vmem>>, vector<32x128xf32>
    %cst_9 = arith.constant 0.000000e+00 : f32
    %8 = vector.broadcast %cst_9 : f32 to vector<8x32xf32>
    %cst_10 = arith.constant 0.000000e+00 : f32
    %9 = vector.broadcast %cst_10 : f32 to vector<8x32xf32>
    %c0_i32 = arith.constant 0 : i32
    %c8_i32 = arith.constant 8 : i32
    %10 = arith.muli %c0_i32, %c8_i32 : i32
    %11 = tpu.assume_multiple %10, 8 : i32
    %12 = arith.index_cast %11 : i32 to index
    %c0_11 = arith.constant 0 : index
    %13 = vector.load %arg7[%12, %c0_11] : memref<64x128xf32, #tpu.memory_space<vmem>>, vector<8x128xf32>
    %cst_12 = arith.constant dense<0.000000e+00> : vector<8x128xf32>
    %14 = tpu.matmul %8, %7, %cst_12 {dimension_numbers = #tpu.dot_dimension_numbers<[1], [0], [0], [1], [0, 0, 1, 1], [], []>} : vector<8x32xf32>, vector<32x128xf32>, vector<8x128xf32> -> vector<8x128xf32>
    %15 = arith.addf %13, %14 : vector<8x128xf32>
    %16 = arith.negf %15 : vector<8x128xf32>
    %17 = math.exp %16 : vector<8x128xf32>
    %cst_13 = arith.constant 1.000000e+00 : f32
    %18 = vector.broadcast %cst_13 : f32 to vector<8x128xf32>
    %19 = arith.addf %18, %17 : vector<8x128xf32>
    %20 = arith.divf %18, %19 : vector<8x128xf32>
    %21 = math.tanh %15 : vector<8x128xf32>
    %22 = vector.extract_strided_slice %20 {offsets = [0, 0], sizes = [8, 32], strides = [1, 1]} : vector<8x128xf32> to vector<8x32xf32>
    %23 = vector.extract_strided_slice %20 {offsets = [0, 32], sizes = [8, 32], strides = [1, 1]} : vector<8x128xf32> to vector<8x32xf32>
    %24 = vector.extract_strided_slice %21 {offsets = [0, 64], sizes = [8, 32], strides = [1, 1]} : vector<8x128xf32> to vector<8x32xf32>
    %25 = vector.extract_strided_slice %20 {offsets = [0, 96], sizes = [8, 32], strides = [1, 1]} : vector<8x128xf32> to vector<8x32xf32>
    %26 = arith.mulf %23, %9 : vector<8x32xf32>
    %27 = arith.mulf %22, %24 : vector<8x32xf32>
    %28 = arith.addf %26, %27 : vector<8x32xf32>
    %29 = math.tanh %28 : vector<8x32xf32>
    %30 = arith.mulf %25, %29 : vector<8x32xf32>
    %c1_i32 = arith.constant 1 : i32
    %c8_i32_14 = arith.constant 8 : i32
    %31 = arith.muli %c1_i32, %c8_i32_14 : i32
    %32 = tpu.assume_multiple %31, 8 : i32
    %33 = arith.index_cast %32 : i32 to index
    %c0_15 = arith.constant 0 : index
    %34 = vector.load %arg7[%33, %c0_15] : memref<64x128xf32, #tpu.memory_space<vmem>>, vector<8x128xf32>
    %cst_16 = arith.constant dense<0.000000e+00> : vector<8x128xf32>
    %35 = tpu.matmul %30, %7, %cst_16 {dimension_numbers = #tpu.dot_dimension_numbers<[1], [0], [0], [1], [0, 0, 1, 1], [], []>} : vector<8x32xf32>, vector<32x128xf32>, vector<8x128xf32> -> vector<8x128xf32>
    %36 = arith.addf %34, %35 : vector<8x128xf32>
    %37 = arith.negf %36 : vector<8x128xf32>
    %38 = math.exp %37 : vector<8x128xf32>
    %cst_17 = arith.constant 1.000000e+00 : f32
    %39 = vector.broadcast %cst_17 : f32 to vector<8x128xf32>
    %40 = arith.addf %39, %38 : vector<8x128xf32>
    %41 = arith.divf %39, %40 : vector<8x128xf32>
    %42 = math.tanh %36 : vector<8x128xf32>
    %43 = vector.extract_strided_slice %41 {offsets = [0, 0], sizes = [8, 32], strides = [1, 1]} : vector<8x128xf32> to vector<8x32xf32>
    %44 = vector.extract_strided_slice %41 {offsets = [0, 32], sizes = [8, 32], strides = [1, 1]} : vector<8x128xf32> to vector<8x32xf32>
    %45 = vector.extract_strided_slice %42 {offsets = [0, 64], sizes = [8, 32], strides = [1, 1]} : vector<8x128xf32> to vector<8x32xf32>
    %46 = vector.extract_strided_slice %41 {offsets = [0, 96], sizes = [8, 32], strides = [1, 1]} : vector<8x128xf32> to vector<8x32xf32>
    %47 = arith.mulf %44, %28 : vector<8x32xf32>
    %48 = arith.mulf %43, %45 : vector<8x32xf32>
    %49 = arith.addf %47, %48 : vector<8x32xf32>
    %50 = math.tanh %49 : vector<8x32xf32>
    %51 = arith.mulf %46, %50 : vector<8x32xf32>
    %c2_i32 = arith.constant 2 : i32
    %c8_i32_18 = arith.constant 8 : i32
    %52 = arith.muli %c2_i32, %c8_i32_18 : i32
    %53 = tpu.assume_multiple %52, 8 : i32
    %54 = arith.index_cast %53 : i32 to index
    %c0_19 = arith.constant 0 : index
    %55 = vector.load %arg7[%54, %c0_19] : memref<64x128xf32, #tpu.memory_space<vmem>>, vector<8x128xf32>
    %cst_20 = arith.constant dense<0.000000e+00> : vector<8x128xf32>
    %56 = tpu.matmul %51, %7, %cst_20 {dimension_numbers = #tpu.dot_dimension_numbers<[1], [0], [0], [1], [0, 0, 1, 1], [], []>} : vector<8x32xf32>, vector<32x128xf32>, vector<8x128xf32> -> vector<8x128xf32>
    %57 = arith.addf %55, %56 : vector<8x128xf32>
    %58 = arith.negf %57 : vector<8x128xf32>
    %59 = math.exp %58 : vector<8x128xf32>
    %cst_21 = arith.constant 1.000000e+00 : f32
    %60 = vector.broadcast %cst_21 : f32 to vector<8x128xf32>
    %61 = arith.addf %60, %59 : vector<8x128xf32>
    %62 = arith.divf %60, %61 : vector<8x128xf32>
    %63 = math.tanh %57 : vector<8x128xf32>
    %64 = vector.extract_strided_slice %62 {offsets = [0, 0], sizes = [8, 32], strides = [1, 1]} : vector<8x128xf32> to vector<8x32xf32>
    %65 = vector.extract_strided_slice %62 {offsets = [0, 32], sizes = [8, 32], strides = [1, 1]} : vector<8x128xf32> to vector<8x32xf32>
    %66 = vector.extract_strided_slice %63 {offsets = [0, 64], sizes = [8, 32], strides = [1, 1]} : vector<8x128xf32> to vector<8x32xf32>
    %67 = vector.extract_strided_slice %62 {offsets = [0, 96], sizes = [8, 32], strides = [1, 1]} : vector<8x128xf32> to vector<8x32xf32>
    %68 = arith.mulf %65, %49 : vector<8x32xf32>
    %69 = arith.mulf %64, %66 : vector<8x32xf32>
    %70 = arith.addf %68, %69 : vector<8x32xf32>
    %71 = math.tanh %70 : vector<8x32xf32>
    %72 = arith.mulf %67, %71 : vector<8x32xf32>
    %c3_i32 = arith.constant 3 : i32
    %c8_i32_22 = arith.constant 8 : i32
    %73 = arith.muli %c3_i32, %c8_i32_22 : i32
    %74 = tpu.assume_multiple %73, 8 : i32
    %75 = arith.index_cast %74 : i32 to index
    %c0_23 = arith.constant 0 : index
    %76 = vector.load %arg7[%75, %c0_23] : memref<64x128xf32, #tpu.memory_space<vmem>>, vector<8x128xf32>
    %cst_24 = arith.constant dense<0.000000e+00> : vector<8x128xf32>
    %77 = tpu.matmul %72, %7, %cst_24 {dimension_numbers = #tpu.dot_dimension_numbers<[1], [0], [0], [1], [0, 0, 1, 1], [], []>} : vector<8x32xf32>, vector<32x128xf32>, vector<8x128xf32> -> vector<8x128xf32>
    %78 = arith.addf %76, %77 : vector<8x128xf32>
    %79 = arith.negf %78 : vector<8x128xf32>
    %80 = math.exp %79 : vector<8x128xf32>
    %cst_25 = arith.constant 1.000000e+00 : f32
    %81 = vector.broadcast %cst_25 : f32 to vector<8x128xf32>
    %82 = arith.addf %81, %80 : vector<8x128xf32>
    %83 = arith.divf %81, %82 : vector<8x128xf32>
    %84 = math.tanh %78 : vector<8x128xf32>
    %85 = vector.extract_strided_slice %83 {offsets = [0, 0], sizes = [8, 32], strides = [1, 1]} : vector<8x128xf32> to vector<8x32xf32>
    %86 = vector.extract_strided_slice %83 {offsets = [0, 32], sizes = [8, 32], strides = [1, 1]} : vector<8x128xf32> to vector<8x32xf32>
    %87 = vector.extract_strided_slice %84 {offsets = [0, 64], sizes = [8, 32], strides = [1, 1]} : vector<8x128xf32> to vector<8x32xf32>
    %88 = vector.extract_strided_slice %83 {offsets = [0, 96], sizes = [8, 32], strides = [1, 1]} : vector<8x128xf32> to vector<8x32xf32>
    %89 = arith.mulf %86, %70 : vector<8x32xf32>
    %90 = arith.mulf %85, %87 : vector<8x32xf32>
    %91 = arith.addf %89, %90 : vector<8x32xf32>
    %92 = math.tanh %91 : vector<8x32xf32>
    %93 = arith.mulf %88, %92 : vector<8x32xf32>
    %c4_i32 = arith.constant 4 : i32
    %c8_i32_26 = arith.constant 8 : i32
    %94 = arith.muli %c4_i32, %c8_i32_26 : i32
    %95 = tpu.assume_multiple %94, 8 : i32
    %96 = arith.index_cast %95 : i32 to index
    %c0_27 = arith.constant 0 : index
    %97 = vector.load %arg7[%96, %c0_27] : memref<64x128xf32, #tpu.memory_space<vmem>>, vector<8x128xf32>
    %cst_28 = arith.constant dense<0.000000e+00> : vector<8x128xf32>
    %98 = tpu.matmul %93, %7, %cst_28 {dimension_numbers = #tpu.dot_dimension_numbers<[1], [0], [0], [1], [0, 0, 1, 1], [], []>} : vector<8x32xf32>, vector<32x128xf32>, vector<8x128xf32> -> vector<8x128xf32>
    %99 = arith.addf %97, %98 : vector<8x128xf32>
    %100 = arith.negf %99 : vector<8x128xf32>
    %101 = math.exp %100 : vector<8x128xf32>
    %cst_29 = arith.constant 1.000000e+00 : f32
    %102 = vector.broadcast %cst_29 : f32 to vector<8x128xf32>
    %103 = arith.addf %102, %101 : vector<8x128xf32>
    %104 = arith.divf %102, %103 : vector<8x128xf32>
    %105 = math.tanh %99 : vector<8x128xf32>
    %106 = vector.extract_strided_slice %104 {offsets = [0, 0], sizes = [8, 32], strides = [1, 1]} : vector<8x128xf32> to vector<8x32xf32>
    %107 = vector.extract_strided_slice %104 {offsets = [0, 32], sizes = [8, 32], strides = [1, 1]} : vector<8x128xf32> to vector<8x32xf32>
    %108 = vector.extract_strided_slice %105 {offsets = [0, 64], sizes = [8, 32], strides = [1, 1]} : vector<8x128xf32> to vector<8x32xf32>
    %109 = vector.extract_strided_slice %104 {offsets = [0, 96], sizes = [8, 32], strides = [1, 1]} : vector<8x128xf32> to vector<8x32xf32>
    %110 = arith.mulf %107, %91 : vector<8x32xf32>
    %111 = arith.mulf %106, %108 : vector<8x32xf32>
    %112 = arith.addf %110, %111 : vector<8x32xf32>
    %113 = math.tanh %112 : vector<8x32xf32>
    %114 = arith.mulf %109, %113 : vector<8x32xf32>
    %c5_i32 = arith.constant 5 : i32
    %c8_i32_30 = arith.constant 8 : i32
    %115 = arith.muli %c5_i32, %c8_i32_30 : i32
    %116 = tpu.assume_multiple %115, 8 : i32
    %117 = arith.index_cast %116 : i32 to index
    %c0_31 = arith.constant 0 : index
    %118 = vector.load %arg7[%117, %c0_31] : memref<64x128xf32, #tpu.memory_space<vmem>>, vector<8x128xf32>
    %cst_32 = arith.constant dense<0.000000e+00> : vector<8x128xf32>
    %119 = tpu.matmul %114, %7, %cst_32 {dimension_numbers = #tpu.dot_dimension_numbers<[1], [0], [0], [1], [0, 0, 1, 1], [], []>} : vector<8x32xf32>, vector<32x128xf32>, vector<8x128xf32> -> vector<8x128xf32>
    %120 = arith.addf %118, %119 : vector<8x128xf32>
    %121 = arith.negf %120 : vector<8x128xf32>
    %122 = math.exp %121 : vector<8x128xf32>
    %cst_33 = arith.constant 1.000000e+00 : f32
    %123 = vector.broadcast %cst_33 : f32 to vector<8x128xf32>
    %124 = arith.addf %123, %122 : vector<8x128xf32>
    %125 = arith.divf %123, %124 : vector<8x128xf32>
    %126 = math.tanh %120 : vector<8x128xf32>
    %127 = vector.extract_strided_slice %125 {offsets = [0, 0], sizes = [8, 32], strides = [1, 1]} : vector<8x128xf32> to vector<8x32xf32>
    %128 = vector.extract_strided_slice %125 {offsets = [0, 32], sizes = [8, 32], strides = [1, 1]} : vector<8x128xf32> to vector<8x32xf32>
    %129 = vector.extract_strided_slice %126 {offsets = [0, 64], sizes = [8, 32], strides = [1, 1]} : vector<8x128xf32> to vector<8x32xf32>
    %130 = vector.extract_strided_slice %125 {offsets = [0, 96], sizes = [8, 32], strides = [1, 1]} : vector<8x128xf32> to vector<8x32xf32>
    %131 = arith.mulf %128, %112 : vector<8x32xf32>
    %132 = arith.mulf %127, %129 : vector<8x32xf32>
    %133 = arith.addf %131, %132 : vector<8x32xf32>
    %134 = math.tanh %133 : vector<8x32xf32>
    %135 = arith.mulf %130, %134 : vector<8x32xf32>
    %c6_i32 = arith.constant 6 : i32
    %c8_i32_34 = arith.constant 8 : i32
    %136 = arith.muli %c6_i32, %c8_i32_34 : i32
    %137 = tpu.assume_multiple %136, 8 : i32
    %138 = arith.index_cast %137 : i32 to index
    %c0_35 = arith.constant 0 : index
    %139 = vector.load %arg7[%138, %c0_35] : memref<64x128xf32, #tpu.memory_space<vmem>>, vector<8x128xf32>
    %cst_36 = arith.constant dense<0.000000e+00> : vector<8x128xf32>
    %140 = tpu.matmul %135, %7, %cst_36 {dimension_numbers = #tpu.dot_dimension_numbers<[1], [0], [0], [1], [0, 0, 1, 1], [], []>} : vector<8x32xf32>, vector<32x128xf32>, vector<8x128xf32> -> vector<8x128xf32>
    %141 = arith.addf %139, %140 : vector<8x128xf32>
    %142 = arith.negf %141 : vector<8x128xf32>
    %143 = math.exp %142 : vector<8x128xf32>
    %cst_37 = arith.constant 1.000000e+00 : f32
    %144 = vector.broadcast %cst_37 : f32 to vector<8x128xf32>
    %145 = arith.addf %144, %143 : vector<8x128xf32>
    %146 = arith.divf %144, %145 : vector<8x128xf32>
    %147 = math.tanh %141 : vector<8x128xf32>
    %148 = vector.extract_strided_slice %146 {offsets = [0, 0], sizes = [8, 32], strides = [1, 1]} : vector<8x128xf32> to vector<8x32xf32>
    %149 = vector.extract_strided_slice %146 {offsets = [0, 32], sizes = [8, 32], strides = [1, 1]} : vector<8x128xf32> to vector<8x32xf32>
    %150 = vector.extract_strided_slice %147 {offsets = [0, 64], sizes = [8, 32], strides = [1, 1]} : vector<8x128xf32> to vector<8x32xf32>
    %151 = vector.extract_strided_slice %146 {offsets = [0, 96], sizes = [8, 32], strides = [1, 1]} : vector<8x128xf32> to vector<8x32xf32>
    %152 = arith.mulf %149, %133 : vector<8x32xf32>
    %153 = arith.mulf %148, %150 : vector<8x32xf32>
    %154 = arith.addf %152, %153 : vector<8x32xf32>
    %155 = math.tanh %154 : vector<8x32xf32>
    %156 = arith.mulf %151, %155 : vector<8x32xf32>
    %c7_i32 = arith.constant 7 : i32
    %c8_i32_38 = arith.constant 8 : i32
    %157 = arith.muli %c7_i32, %c8_i32_38 : i32
    %158 = tpu.assume_multiple %157, 8 : i32
    %159 = arith.index_cast %158 : i32 to index
    %c0_39 = arith.constant 0 : index
    %160 = vector.load %arg7[%159, %c0_39] : memref<64x128xf32, #tpu.memory_space<vmem>>, vector<8x128xf32>
    %cst_40 = arith.constant dense<0.000000e+00> : vector<8x128xf32>
    %161 = tpu.matmul %156, %7, %cst_40 {dimension_numbers = #tpu.dot_dimension_numbers<[1], [0], [0], [1], [0, 0, 1, 1], [], []>} : vector<8x32xf32>, vector<32x128xf32>, vector<8x128xf32> -> vector<8x128xf32>
    %162 = arith.addf %160, %161 : vector<8x128xf32>
    %163 = arith.negf %162 : vector<8x128xf32>
    %164 = math.exp %163 : vector<8x128xf32>
    %cst_41 = arith.constant 1.000000e+00 : f32
    %165 = vector.broadcast %cst_41 : f32 to vector<8x128xf32>
    %166 = arith.addf %165, %164 : vector<8x128xf32>
    %167 = arith.divf %165, %166 : vector<8x128xf32>
    %168 = math.tanh %162 : vector<8x128xf32>
    %169 = vector.extract_strided_slice %167 {offsets = [0, 0], sizes = [8, 32], strides = [1, 1]} : vector<8x128xf32> to vector<8x32xf32>
    %170 = vector.extract_strided_slice %167 {offsets = [0, 32], sizes = [8, 32], strides = [1, 1]} : vector<8x128xf32> to vector<8x32xf32>
    %171 = vector.extract_strided_slice %168 {offsets = [0, 64], sizes = [8, 32], strides = [1, 1]} : vector<8x128xf32> to vector<8x32xf32>
    %172 = vector.extract_strided_slice %167 {offsets = [0, 96], sizes = [8, 32], strides = [1, 1]} : vector<8x128xf32> to vector<8x32xf32>
    %173 = arith.mulf %170, %154 : vector<8x32xf32>
    %174 = arith.mulf %169, %171 : vector<8x32xf32>
    %175 = arith.addf %173, %174 : vector<8x32xf32>
    %176 = math.tanh %175 : vector<8x32xf32>
    %177 = arith.mulf %172, %176 : vector<8x32xf32>
    %c8_i32_42 = arith.constant 8 : i32
    %c0_43 = arith.constant 0 : index
    %c0_44 = arith.constant 0 : index
    %178 = vector.load %arg4[%c0_43, %c0_44] : memref<32x128xf32, #tpu.memory_space<vmem>>, vector<32x128xf32>
    %cst_45 = arith.constant dense<0.000000e+00> : vector<8x128xf32>
    %179 = tpu.matmul %177, %178, %cst_45 {dimension_numbers = #tpu.dot_dimension_numbers<[1], [0], [0], [1], [0, 0, 1, 1], [], []>} : vector<8x32xf32>, vector<32x128xf32>, vector<8x128xf32> -> vector<8x128xf32>
    %c0_46 = arith.constant 0 : index
    %c0_47 = arith.constant 0 : index
    %180 = vector.load %arg5[%c0_46, %c0_47] : memref<1x128xf32, #tpu.memory_space<vmem>>, vector<1x128xf32>
    %181 = vector.broadcast %180 : vector<1x128xf32> to vector<8x128xf32>
    %182 = arith.addf %179, %181 : vector<8x128xf32>
    %c0_48 = arith.constant 0 : index
    %c0_49 = arith.constant 0 : index
    %183 = vector.load %arg6[%c0_48, %c0_49] : memref<8x128xf32, #tpu.memory_space<vmem>>, vector<8x128xf32>
    tpu.vector_store %arg6[%c0_48, %c0_49], %182 {strides = array<i32>} : memref<8x128xf32, #tpu.memory_space<vmem>>, vector<8x128xf32>,
    return
  }
}

</mosaic_0001>

<bundles_post_ra>
// kernel: neural_network_forward.1
= control target key start
LH: loop header
LB: loop body
LE: loop exit
PB: predicated region body
PF: predicated region fallthrough
CT: control target
= control target key end

     0   :  { %vm61_vm0 = vcmask 1043456   ;;  %vm36_vm1 = vcmask 31744   ;;  %v770_v7 = vmov 0.0   ;;  %s771_s11 = smov 64   ;;  %vm119_vm6 = vcmask 261120   ;;  %s975_s1 = inlined_call_operand.vmem [shape: f32[4,128], index: 1, kind: input, shape index: {}]   ;;  %s976_s0 = inlined_call_operand.vmem [shape: f32[64,4], index: 0, kind: input, shape index: {}]   ;;  %s977_s2 = inlined_call_operand.vmem [shape: f32[32,128], index: 2, kind: input, shape index: {}]   ;;  %s978_s3 = inlined_call_operand.vmem [shape: f32[1,128], index: 3, kind: input, shape index: {}]   ;;  %s979_s4 = inlined_call_operand.vmem [shape: f32[32,128], index: 4, kind: input, shape index: {}]   ;;  %s980_s5 = inlined_call_operand.vmem [shape: f32[1,128], index: 5, kind: input, shape index: {}]   ;;  %s981_s6 = inlined_call_operand.vmem [shape: f32[8,128], index: 6, kind: output, shape index: {}]  }
   0x1   :  { %v31_v0 = vld [vmem:[%s975_s1] sm:$0xf]  ;;  %v28_v1 = vld [vmem:[%s976_s0 + $0x28] sm:$0xff]  ;;  %v817_v2 = vld [vmem:[%s977_s2 + $0x18] sm:$0xff] }
   0x2   :  { %699 = vmatpush.msk.msra.mxu1 %vm61_vm0, %v31_v0  ;;  %674 = vmatpush.msk.msra.mxu0 %vm61_vm0, %v31_v0  ;;  %v23_v3 = vld [vmem:[%s976_s0] sm:$0xff]  ;;  %v826_v4 = vld [vmem:[%s977_s2 + $0x10] sm:$0xff]  ;;  %v833_v5 = vld [vmem:[%s977_s2 + $0x8] sm:$0xff] }
   0x3   :  { %680 = vmatmul.msk.f32.vlgmr.msra.gmra.mxu1 %vm36_vm1, %v28_v1  ;;  %675 = vmatmul.msk.f32.vlgmr.msra.gmra.mxu0 %vm36_vm1, %v23_v3  ;;  %v841_v6 = vld [vmem:[%s977_s2] sm:$0xff]  ;;  %v29_v34 = vld [vmem:[%s976_s0 + $0x30] sm:$0xff]  ;;  %v30_v35 = vld [vmem:[%s976_s0 + $0x38] sm:$0xff] }
   0x4   :  { %135 = vmatpush.msrb.mxu1 %v817_v2  ;;  %700 = vmatpush.msk.msra.mxu2 %vm61_vm0, %v31_v0  ;;  %v868_v10 = vld [vmem:[%s978_s3] ss:$0 sm:$0xff]  ;;  %s772_s3 = smov 32   ;;  %v24_v38 = vld [vmem:[%s976_s0 + $0x8] sm:$0xff] }
   0x5   :  { %265 = vmatpush.msra.mxu3 %v817_v2  ;;  %681 = vmatmul.msk.f32.vlgmr.msra.gmra.mxu2 %vm36_vm1, %v29_v34 }
   0x6   :  { %200 = vmatpush.msrb.mxu2 %v817_v2  ;;  %136 = vmatpush.msrb.mxu1 %v826_v4 }
   0x7   :  { %266 = vmatpush.msra.mxu3 %v826_v4 }
   0x8   :  { %201 = vmatpush.msrb.mxu2 %v826_v4  ;;  %137 = vmatpush.msrb.mxu1 %v833_v5 }
   0x9   :  { %267 = vmatpush.msra.mxu3 %v833_v5 }
   0xa   :  { %202 = vmatpush.msrb.mxu2 %v833_v5  ;;  %138 = vmatpush.msrb.mxu1 %v841_v6 }
   0xb   :  { %139 = vmatmul.f32.vlgmr.msrb.gmra.mxu1 %v770_v7  ;;  %268 = vmatpush.msra.mxu3 %v841_v6 }
   0xc   :  { %203 = vmatpush.msrb.mxu2 %v841_v6  ;;  %330 = vmatpush.msra.mxu1 %v817_v2 }
   0xd   :  { %460 = vmatpush.msrb.mxu3 %v817_v2  ;;  %682 = vmatmul.msk.f32.gmra.mxu2 %vm36_vm1, %v30_v35 }
   0xe   :  { %331 = vmatpush.msra.mxu1 %v826_v4  ;;  %395 = vmatpush.msra.mxu2 %v817_v2 }
   0xf   :  { %461 = vmatpush.msrb.mxu3 %v826_v4  ;;  %676 = vmatmul.msk.f32.gmra.mxu0 %vm36_vm1, %v24_v38 }
  0x10   :  { %332 = vmatpush.msra.mxu1 %v833_v5  ;;  %396 = vmatpush.msra.mxu2 %v826_v4 }
  0x11   :  { %462 = vmatpush.msrb.mxu3 %v833_v5 }
  0x12   :  { %333 = vmatpush.msra.mxu1 %v841_v6  ;;  %397 = vmatpush.msra.mxu2 %v833_v5 }
  0x13   :  { %463 = vmatpush.msrb.mxu3 %v841_v6 }
  0x14   :  { %525 = vmatpush.msrb.mxu1 %v817_v2  ;;  %398 = vmatpush.msra.mxu2 %v841_v6 }
  0x16   :  { %526 = vmatpush.msrb.mxu1 %v826_v4 }
  0x18   :  { %527 = vmatpush.msrb.mxu1 %v833_v5 }
  0x1a   :  { %528 = vmatpush.msrb.mxu1 %v841_v6 }
  0x80   :  { %v863_v8 = vpop.f32.mrf.mxu1  ;;  %v82_v9 = vpop.f32.mrf.mxu0 }
  0x81   :  { %v83_v11 = vadd.f32 %v868_v10, %v82_v9 }
  0x88   :  { %v140_v12 = vpop.f32.mrf.mxu1  ;;  %v896_v40 = vpop.f32.mrf.mxu2 }
  0x89   :  { %v143_v13 = vadd.f32 %v140_v12, %v83_v11 }
  0x8b   :  { %706 = vtanh.f32 %v143_v13  ;;  %v683_v15 = vmul.f32 -1.442695, %v143_v13 }
  0x8c   :  { %v85_v42 = vpop.f32.mrf.mxu0 }
  0x8d   :  { %708 = vpow2.f32 %v683_v15  ;;  %v86_v43 = vadd.f32 %v868_v10, %v85_v42 }
  0x90   :  { %v898_v41 = vpop.f32.mrf.mxu2 }
  0x91   :  { %v707_v14 = vpop.eup %706 }
  0x92   :  { %166 = vrot.lane.b32.xlu0 %v707_v14, %s771_s11 }
  0x93   :  { %v709_v16 = vpop.eup %708 }
  0x94   :  { %v147_v17 = vadd.f32 1.0, %v709_v16 }
  0x96   :  { %710 = vrcp.f32 %v147_v17  ;;  %v159_v23 = vand.u32 2147483648, %v147_v17  ;;  %vm153_vm3 = vweird.f32 %v147_v17  ;;  %v157_v24 = vand.u32 2147483647, %v147_v17 }
  0x98   :  { %v160_v26 = vor.u32 1.1754944e-38, %v159_v23  ;;  %vm158_vm5 = vcmp.eq.f32.partialorder %v157_v24, 8.507059e+37 }
  0x9c   :  { %v711_v18 = vpop.eup %710 }
  0x9d   :  { %v149_v19 = vmul.f32 %v711_v18, %v147_v17  ;;  %vm154_vm2 = vweird.f32 %v711_v18 }
  0x9e   :  { %vm155_vm4 = vmor %vm153_vm3, %vm154_vm2 }
  0x9f   :  { %v150_v20 = vsub.f32 1.0, %v149_v19 }
  0xa1   :  { %v151_v21 = vmul.f32 %v711_v18, %v150_v20 }
  0xa3   :  { %v152_v22 = vadd.f32 %v711_v18, %v151_v21 }
  0xa5   :  { %v156_v25 = vsel %vm155_vm4, %v711_v18, %v152_v22 }
  0xa6   :  { %v161_v28 = vsel %vm158_vm5, %v160_v26, %v156_v25 }
  0xa7   :  { %v164_v30 = vmul.f32 0.0, %v161_v28 }
 0x104   :  { %v167_v27 = vpop.permute.xlu0 %166 }
 0x105   :  { %v169_v29 = vmul.f32 %v167_v27, %v161_v28 }
 0x107   :  { %171 = vrot.lane.b32.xlu0 %v169_v29, %s772_s3 }
 0x179   :  { %v172_v31 = vpop.permute.xlu0 %171 }
 0x17a   :  { %v174_v32 = vadd.f32 %v172_v31, %v164_v30 }
 0x17c   :  { %712 = vtanh.f32 %v174_v32 }
 0x182   :  { %v713_v33 = vpop.eup %712 }
 0x183   :  { %177 = vrot.lane.b32.xlu1 %v713_v33, %s771_s11 }
 0x1f5   :  { %v178_v36 = vpop.permute.xlu1 %177 }
 0x1f6   :  { %v180_v37 = vmul.f32 %v178_v36, %v161_v28 }
 0x1f8   :  { %184 = vrot.lane.b32.xlu1 %v180_v37, %s772_s3 }
 0x26a   :  { %v185_v39 = vpop.permute.xlu1 %184 }
 0x26b   :  { %684 = vmatmul.msk.f32.vlgmr.msrb.gmra.mxu2 %vm119_vm6, %v185_v39 }
 0x26c   :  { %590 = vmatpush.msrb.mxu2 %v817_v2 }
 0x26e   :  { %591 = vmatpush.msrb.mxu2 %v826_v4  ;;  %v25_v4 = vld [vmem:[%s976_s0 + $0x10] sm:$0xff] }
 0x26f   :  { %677 = vmatmul.msk.f32.gmra.mxu0 %vm36_vm1, %v25_v4 }
 0x270   :  { %592 = vmatpush.msrb.mxu2 %v833_v5 }
 0x272   :  { %593 = vmatpush.msrb.mxu2 %v841_v6 }
 0x2ec   :  { %v88_v6 = vpop.f32.mrf.mxu0 }
 0x2ed   :  { %v89_v7 = vadd.f32 %v868_v10, %v88_v6 }
 0x2ee   :  { %v205_v44 = vpop.f32.mrf.mxu2 }
 0x2ef   :  { %v208_v45 = vadd.f32 %v205_v44, %v86_v43 }
 0x2f1   :  { %714 = vtanh.f32 %v208_v45  ;;  %v685_v47 = vmul.f32 -1.442695, %v208_v45 }
 0x2f3   :  { %716 = vpow2.f32 %v685_v47 }
 0x2f7   :  { %v715_v46 = vpop.eup %714 }
 0x2f8   :  { %231 = vrot.lane.b32.xlu2 %v715_v46, %s771_s11 }
 0x2f9   :  { %v717_v48 = vpop.eup %716 }
 0x2fa   :  { %v212_v49 = vadd.f32 1.0, %v717_v48 }
 0x2fc   :  { %718 = vrcp.f32 %v212_v49  ;;  %v224_v55 = vand.u32 2147483648, %v212_v49  ;;  %vm218_vm8 = vweird.f32 %v212_v49  ;;  %v222_v56 = vand.u32 2147483647, %v212_v49 }
 0x2fe   :  { %v225_v58 = vor.u32 1.1754944e-38, %v224_v55  ;;  %vm223_vm10 = vcmp.eq.f32.partialorder %v222_v56, 8.507059e+37 }
 0x302   :  { %v719_v50 = vpop.eup %718 }
 0x303   :  { %v214_v51 = vmul.f32 %v719_v50, %v212_v49  ;;  %vm219_vm7 = vweird.f32 %v719_v50 }
 0x304   :  { %vm220_vm9 = vmor %vm218_vm8, %vm219_vm7 }
 0x305   :  { %v215_v52 = vsub.f32 1.0, %v214_v51 }
 0x307   :  { %v216_v53 = vmul.f32 %v719_v50, %v215_v52 }
 0x309   :  { %v217_v54 = vadd.f32 %v719_v50, %v216_v53 }
 0x30b   :  { %v221_v57 = vsel %vm220_vm9, %v719_v50, %v217_v54 }
 0x30c   :  { %v226_v60 = vsel %vm223_vm10, %v225_v58, %v221_v57 }
 0x30d   :  { %v229_v62 = vmul.f32 %v226_v60, %v174_v32  ;;  %v26_v32 = vld [vmem:[%s976_s0 + $0x18] sm:$0xff] }
 0x30e   :  { %678 = vmatmul.msk.f32.gmra.mxu0 %vm36_vm1, %v26_v32 }
 0x352   :  { %v232_v59 = vpop.permute.xlu2 %231 }
 0x353   :  { %v234_v61 = vmul.f32 %v232_v59, %v226_v60 }
 0x355   :  { %236 = vrot.lane.b32.xlu2 %v234_v61, %s772_s3 }
 0x38b   :  { %v91_v36 = vpop.f32.mrf.mxu0 }
 0x38c   :  { %v92_v37 = vadd.f32 %v868_v10, %v91_v36 }
 0x3af   :  { %v237_v63 = vpop.permute.xlu2 %236 }
 0x3b0   :  { %v239_v0 = vadd.f32 %v237_v63, %v229_v62 }
 0x3b2   :  { %720 = vtanh.f32 %v239_v0 }
 0x3b8   :  { %v721_v1 = vpop.eup %720 }
 0x3b9   :  { %242 = vrot.lane.b32.xlu0 %v721_v1, %s771_s11 }
 0x42b   :  { %v243_v2 = vpop.permute.xlu0 %242 }
 0x42c   :  { %v245_v3 = vmul.f32 %v243_v2, %v226_v60 }
 0x42e   :  { %249 = vrot.lane.b32.xlu1 %v245_v3, %s772_s3 }
 0x4a0   :  { %v250_v5 = vpop.permute.xlu1 %249 }
 0x4a1   :  { %686 = vmatmul.msk.f32.vlgmr.msra.gmra.mxu3 %vm119_vm6, %v250_v5 }
 0x524   :  { %v270_v9 = vpop.f32.mrf.mxu3 }
 0x525   :  { %v273_v11 = vadd.f32 %v270_v9, %v89_v7 }
 0x527   :  { %722 = vtanh.f32 %v273_v11  ;;  %v687_v13 = vmul.f32 -1.442695, %v273_v11 }
 0x529   :  { %724 = vpow2.f32 %v687_v13 }
 0x52d   :  { %v723_v12 = vpop.eup %722 }
 0x52e   :  { %296 = vrot.lane.b32.xlu2 %v723_v12, %s771_s11 }
 0x52f   :  { %v725_v14 = vpop.eup %724 }
 0x530   :  { %v277_v15 = vadd.f32 1.0, %v725_v14 }
 0x532   :  { %726 = vrcp.f32 %v277_v15  ;;  %v289_v21 = vand.u32 2147483648, %v277_v15  ;;  %vm283_vm12 = vweird.f32 %v277_v15  ;;  %v287_v22 = vand.u32 2147483647, %v277_v15 }
 0x534   :  { %v290_v24 = vor.u32 1.1754944e-38, %v289_v21  ;;  %vm288_vm14 = vcmp.eq.f32.partialorder %v287_v22, 8.507059e+37 }
 0x538   :  { %v727_v16 = vpop.eup %726 }
 0x539   :  { %v279_v17 = vmul.f32 %v727_v16, %v277_v15  ;;  %vm284_vm11 = vweird.f32 %v727_v16 }
 0x53a   :  { %vm285_vm13 = vmor %vm283_vm12, %vm284_vm11 }
 0x53b   :  { %v280_v18 = vsub.f32 1.0, %v279_v17 }
 0x53d   :  { %v281_v19 = vmul.f32 %v727_v16, %v280_v18 }
 0x53f   :  { %v282_v20 = vadd.f32 %v727_v16, %v281_v19 }
 0x541   :  { %v286_v23 = vsel %vm285_vm13, %v727_v16, %v282_v20 }
 0x542   :  { %v291_v26 = vsel %vm288_vm14, %v290_v24, %v286_v23 }
 0x543   :  { %v294_v28 = vmul.f32 %v291_v26, %v239_v0  ;;  %v27_v0 = vld [vmem:[%s976_s0 + $0x20] sm:$0xff] }
 0x544   :  { %679 = vmatmul.msk.f32.gmra.mxu0 %vm36_vm1, %v27_v0 }
 0x588   :  { %v297_v25 = vpop.permute.xlu2 %296 }
 0x589   :  { %v299_v27 = vmul.f32 %v297_v25, %v291_v26 }
 0x58b   :  { %301 = vrot.lane.b32.xlu0 %v299_v27, %s772_s3 }
 0x5c1   :  { %v94_v2 = vpop.f32.mrf.mxu0 }
 0x5c2   :  { %v95_v3 = vadd.f32 %v868_v10, %v94_v2 }
 0x5fd   :  { %v302_v29 = vpop.permute.xlu0 %301 }
 0x5fe   :  { %v304_v30 = vadd.f32 %v302_v29, %v294_v28 }
 0x600   :  { %728 = vtanh.f32 %v304_v30 }
 0x606   :  { %v729_v31 = vpop.eup %728 }
 0x607   :  { %307 = vrot.lane.b32.xlu1 %v729_v31, %s771_s11  ;;  %v98_v31 = vadd.f32 %v868_v10, %v863_v8 }
 0x679   :  { %v308_v33 = vpop.permute.xlu1 %307 }
 0x67a   :  { %v310_v34 = vmul.f32 %v308_v33, %v291_v26 }
 0x67c   :  { %314 = vrot.lane.b32.xlu2 %v310_v34, %s772_s3 }
 0x6d6   :  { %v315_v35 = vpop.permute.xlu2 %314 }
 0x6d7   :  { %688 = vmatmul.msk.f32.vlgmr.msra.gmra.mxu1 %vm119_vm6, %v315_v35 }
 0x754   :  { %v335_v38 = vpop.f32.mrf.mxu1 }
 0x755   :  { %v338_v39 = vadd.f32 %v335_v38, %v92_v37 }
 0x757   :  { %730 = vtanh.f32 %v338_v39  ;;  %v689_v43 = vmul.f32 -1.442695, %v338_v39 }
 0x759   :  { %732 = vpow2.f32 %v689_v43 }
 0x75d   :  { %v731_v42 = vpop.eup %730 }
 0x75e   :  { %361 = vrot.lane.b32.xlu0 %v731_v42, %s771_s11 }
 0x75f   :  { %v733_v44 = vpop.eup %732 }
 0x760   :  { %v342_v45 = vadd.f32 1.0, %v733_v44 }
 0x762   :  { %734 = vrcp.f32 %v342_v45  ;;  %v354_v51 = vand.u32 2147483648, %v342_v45  ;;  %vm348_vm0 = vweird.f32 %v342_v45  ;;  %v352_v52 = vand.u32 2147483647, %v342_v45 }
 0x764   :  { %v355_v54 = vor.u32 1.1754944e-38, %v354_v51  ;;  %vm353_vm3 = vcmp.eq.f32.partialorder %v352_v52, 8.507059e+37 }
 0x768   :  { %v735_v46 = vpop.eup %734 }
 0x769   :  { %v344_v47 = vmul.f32 %v735_v46, %v342_v45  ;;  %vm349_vm15 = vweird.f32 %v735_v46 }
 0x76a   :  { %vm350_vm2 = vmor %vm348_vm0, %vm349_vm15 }
 0x76b   :  { %v345_v48 = vsub.f32 1.0, %v344_v47 }
 0x76d   :  { %v346_v49 = vmul.f32 %v735_v46, %v345_v48 }
 0x76f   :  { %v347_v50 = vadd.f32 %v735_v46, %v346_v49 }
 0x771   :  { %v351_v53 = vsel %vm350_vm2, %v735_v46, %v347_v50 }
 0x772   :  { %v356_v56 = vsel %vm353_vm3, %v355_v54, %v351_v53 }
 0x773   :  { %v359_v58 = vmul.f32 %v356_v56, %v304_v30 }
 0x7d0   :  { %v362_v55 = vpop.permute.xlu0 %361 }
 0x7d1   :  { %v364_v57 = vmul.f32 %v362_v55, %v356_v56 }
 0x7d3   :  { %366 = vrot.lane.b32.xlu1 %v364_v57, %s772_s3 }
 0x845   :  { %v367_v59 = vpop.permute.xlu1 %366 }
 0x846   :  { %v369_v60 = vadd.f32 %v367_v59, %v359_v58  ;;  %v101_v58 = vadd.f32 %v868_v10, %v896_v40 }
 0x848   :  { %736 = vtanh.f32 %v369_v60 }
 0x84e   :  { %v737_v61 = vpop.eup %736 }
 0x84f   :  { %372 = vrot.lane.b32.xlu2 %v737_v61, %s771_s11 }
 0x8a9   :  { %v373_v62 = vpop.permute.xlu2 %372 }
 0x8aa   :  { %v375_v63 = vmul.f32 %v373_v62, %v356_v56 }
 0x8ac   :  { %379 = vrot.lane.b32.xlu0 %v375_v63, %s772_s3 }
 0x91e   :  { %v380_v1 = vpop.permute.xlu0 %379 }
 0x91f   :  { %690 = vmatmul.msk.f32.vlgmr.msra.gmra.mxu2 %vm119_vm6, %v380_v1 }
 0x9a2   :  { %v400_v4 = vpop.f32.mrf.mxu2 }
 0x9a3   :  { %v403_v5 = vadd.f32 %v400_v4, %v95_v3 }
 0x9a5   :  { %738 = vtanh.f32 %v403_v5  ;;  %v691_v7 = vmul.f32 -1.442695, %v403_v5 }
 0x9a7   :  { %740 = vpow2.f32 %v691_v7 }
 0x9ab   :  { %v739_v6 = vpop.eup %738 }
 0x9ac   :  { %426 = vrot.lane.b32.xlu1 %v739_v6, %s771_s11 }
 0x9ad   :  { %v741_v9 = vpop.eup %740 }
 0x9ae   :  { %v407_v11 = vadd.f32 1.0, %v741_v9 }
 0x9b0   :  { %742 = vrcp.f32 %v407_v11  ;;  %v419_v17 = vand.u32 2147483648, %v407_v11  ;;  %vm413_vm4 = vweird.f32 %v407_v11  ;;  %v417_v18 = vand.u32 2147483647, %v407_v11 }
 0x9b2   :  { %v420_v20 = vor.u32 1.1754944e-38, %v419_v17  ;;  %vm418_vm7 = vcmp.eq.f32.partialorder %v417_v18, 8.507059e+37 }
 0x9b6   :  { %v743_v12 = vpop.eup %742 }
 0x9b7   :  { %v409_v13 = vmul.f32 %v743_v12, %v407_v11  ;;  %vm414_vm1 = vweird.f32 %v743_v12 }
 0x9b8   :  { %vm415_vm5 = vmor %vm413_vm4, %vm414_vm1 }
 0x9b9   :  { %v410_v14 = vsub.f32 1.0, %v409_v13 }
 0x9bb   :  { %v411_v15 = vmul.f32 %v743_v12, %v410_v14 }
 0x9bd   :  { %v412_v16 = vadd.f32 %v743_v12, %v411_v15 }
 0x9bf   :  { %v416_v19 = vsel %vm415_vm5, %v743_v12, %v412_v16 }
 0x9c0   :  { %v421_v22 = vsel %vm418_vm7, %v420_v20, %v416_v19 }
 0x9c1   :  { %v424_v24 = vmul.f32 %v421_v22, %v369_v60 }
 0xa1e   :  { %v427_v21 = vpop.permute.xlu1 %426 }
 0xa1f   :  { %v429_v23 = vmul.f32 %v427_v21, %v421_v22  ;;  %v104_v21 = vadd.f32 %v868_v10, %v898_v41 }
 0xa21   :  { %431 = vrot.lane.b32.xlu2 %v429_v23, %s772_s3 }
 0xa7b   :  { %v432_v25 = vpop.permute.xlu2 %431 }
 0xa7c   :  { %v434_v26 = vadd.f32 %v432_v25, %v424_v24 }
 0xa7e   :  { %744 = vtanh.f32 %v434_v26 }
 0xa84   :  { %v745_v27 = vpop.eup %744 }
 0xa85   :  { %437 = vrot.lane.b32.xlu0 %v745_v27, %s771_s11 }
 0xaf7   :  { %v438_v28 = vpop.permute.xlu0 %437 }
 0xaf8   :  { %v440_v29 = vmul.f32 %v438_v28, %v421_v22 }
 0xafa   :  { %444 = vrot.lane.b32.xlu1 %v440_v29, %s772_s3 }
 0xb6c   :  { %v445_v30 = vpop.permute.xlu1 %444 }
 0xb6d   :  { %692 = vmatmul.msk.f32.vlgmr.msrb.gmra.mxu3 %vm119_vm6, %v445_v30 }
 0xbf0   :  { %v465_v32 = vpop.f32.mrf.mxu3 }
 0xbf1   :  { %v468_v33 = vadd.f32 %v465_v32, %v98_v31 }
 0xbf3   :  { %746 = vtanh.f32 %v468_v33  ;;  %v693_v35 = vmul.f32 -1.442695, %v468_v33 }
 0xbf5   :  { %748 = vpow2.f32 %v693_v35 }
 0xbf9   :  { %v747_v34 = vpop.eup %746 }
 0xbfa   :  { %491 = vrot.lane.b32.xlu2 %v747_v34, %s771_s11 }
 0xbfb   :  { %v749_v36 = vpop.eup %748 }
 0xbfc   :  { %v472_v37 = vadd.f32 1.0, %v749_v36 }
 0xbfe   :  { %750 = vrcp.f32 %v472_v37  ;;  %v484_v45 = vand.u32 2147483648, %v472_v37  ;;  %vm478_vm9 = vweird.f32 %v472_v37  ;;  %v482_v8 = vand.u32 2147483647, %v472_v37 }
 0xc00   :  { %v485_v47 = vor.u32 1.1754944e-38, %v484_v45  ;;  %vm483_vm11 = vcmp.eq.f32.partialorder %v482_v8, 8.507059e+37  ;;  %v638_v45 = vld [vmem:[%s979_s4 + $0x10] sm:$0xff]  ;;  %v637_v8 = vld [vmem:[%s979_s4 + $0x8] sm:$0xff] }
 0xc04   :  { %v751_v38 = vpop.eup %750 }
 0xc05   :  { %v474_v39 = vmul.f32 %v751_v38, %v472_v37  ;;  %vm479_vm8 = vweird.f32 %v751_v38 }
 0xc06   :  { %vm480_vm10 = vmor %vm478_vm9, %vm479_vm8 }
 0xc07   :  { %v475_v42 = vsub.f32 1.0, %v474_v39 }
 0xc09   :  { %v476_v43 = vmul.f32 %v751_v38, %v475_v42 }
 0xc0b   :  { %v477_v44 = vadd.f32 %v751_v38, %v476_v43 }
 0xc0d   :  { %v481_v46 = vsel %vm480_vm10, %v751_v38, %v477_v44  ;;  %v639_v44 = vld [vmem:[%s979_s4 + $0x18] sm:$0xff] }
 0xc0e   :  { %v486_v49 = vsel %vm483_vm11, %v485_v47, %v481_v46  ;;  %661 = vmatpush.msra.mxu3 %v639_v44  ;;  %v636_v46 = vld [vmem:[%s979_s4] sm:$0xff] }
 0xc0f   :  { %v489_v51 = vmul.f32 %v486_v49, %v434_v26 }
 0xc10   :  { %662 = vmatpush.msra.mxu3 %v638_v45 }
 0xc12   :  { %663 = vmatpush.msra.mxu3 %v637_v8 }
 0xc14   :  { %664 = vmatpush.msra.mxu3 %v636_v46 }
 0xc54   :  { %v492_v48 = vpop.permute.xlu2 %491 }
 0xc55   :  { %v494_v50 = vmul.f32 %v492_v48, %v486_v49 }
 0xc57   :  { %496 = vrot.lane.b32.xlu0 %v494_v50, %s772_s3  ;;  %v705_v50 = vld [vmem:[%s980_s5] ss:$0 sm:$0xff] }
 0xcc9   :  { %v497_v52 = vpop.permute.xlu0 %496 }
 0xcca   :  { %v499_v53 = vadd.f32 %v497_v52, %v489_v51 }
 0xccc   :  { %752 = vtanh.f32 %v499_v53 }
 0xcd2   :  { %v753_v54 = vpop.eup %752 }
 0xcd3   :  { %502 = vrot.lane.b32.xlu1 %v753_v54, %s771_s11 }
 0xd45   :  { %v503_v55 = vpop.permute.xlu1 %502 }
 0xd46   :  { %v505_v56 = vmul.f32 %v503_v55, %v486_v49 }
 0xd48   :  { %509 = vrot.lane.b32.xlu2 %v505_v56, %s772_s3 }
 0xda2   :  { %v510_v57 = vpop.permute.xlu2 %509 }
 0xda3   :  { %694 = vmatmul.msk.f32.vlgmr.msrb.gmra.mxu1 %vm119_vm6, %v510_v57 }
 0xe20   :  { %v530_v59 = vpop.f32.mrf.mxu1 }
 0xe21   :  { %v533_v60 = vadd.f32 %v530_v59, %v101_v58 }
 0xe23   :  { %754 = vtanh.f32 %v533_v60  ;;  %v695_v62 = vmul.f32 -1.442695, %v533_v60 }
 0xe25   :  { %756 = vpow2.f32 %v695_v62 }
 0xe29   :  { %v755_v61 = vpop.eup %754 }
 0xe2a   :  { %556 = vrot.lane.b32.xlu0 %v755_v61, %s771_s11 }
 0xe2b   :  { %v757_v63 = vpop.eup %756 }
 0xe2c   :  { %v537_v0 = vadd.f32 1.0, %v757_v63 }
 0xe2e   :  { %758 = vrcp.f32 %v537_v0  ;;  %v549_v6 = vand.u32 2147483648, %v537_v0  ;;  %vm543_vm13 = vweird.f32 %v537_v0  ;;  %v547_v40 = vand.u32 2147483647, %v537_v0 }
 0xe30   :  { %v550_v9 = vor.u32 1.1754944e-38, %v549_v6  ;;  %vm548_vm15 = vcmp.eq.f32.partialorder %v547_v40, 8.507059e+37 }
 0xe34   :  { %v759_v1 = vpop.eup %758 }
 0xe35   :  { %v539_v2 = vmul.f32 %v759_v1, %v537_v0  ;;  %vm544_vm12 = vweird.f32 %v759_v1 }
 0xe36   :  { %vm545_vm14 = vmor %vm543_vm13, %vm544_vm12 }
 0xe37   :  { %v540_v3 = vsub.f32 1.0, %v539_v2 }
 0xe39   :  { %v541_v4 = vmul.f32 %v759_v1, %v540_v3 }
 0xe3b   :  { %v542_v5 = vadd.f32 %v759_v1, %v541_v4 }
 0xe3d   :  { %v546_v7 = vsel %vm545_vm14, %v759_v1, %v542_v5 }
 0xe3e   :  { %v551_v12 = vsel %vm548_vm15, %v550_v9, %v546_v7 }
 0xe3f   :  { %v554_v14 = vmul.f32 %v551_v12, %v499_v53 }
 0xe9c   :  { %v557_v11 = vpop.permute.xlu0 %556 }
 0xe9d   :  { %v559_v13 = vmul.f32 %v557_v11, %v551_v12 }
 0xe9f   :  { %561 = vrot.lane.b32.xlu1 %v559_v13, %s772_s3 }
 0xf11   :  { %v562_v15 = vpop.permute.xlu1 %561 }
 0xf12   :  { %v564_v16 = vadd.f32 %v562_v15, %v554_v14 }
 0xf14   :  { %760 = vtanh.f32 %v564_v16 }
 0xf1a   :  { %v761_v17 = vpop.eup %760 }
 0xf1b   :  { %567 = vrot.lane.b32.xlu2 %v761_v17, %s771_s11 }
 0xf75   :  { %v568_v18 = vpop.permute.xlu2 %567 }
 0xf76   :  { %v570_v19 = vmul.f32 %v568_v18, %v551_v12 }
 0xf78   :  { %574 = vrot.lane.b32.xlu0 %v570_v19, %s772_s3 }
 0xfea   :  { %v575_v20 = vpop.permute.xlu0 %574 }
 0xfeb   :  { %696 = vmatmul.msk.f32.vlgmr.msrb.gmra.mxu2 %vm119_vm6, %v575_v20 }
0x106e   :  { %v595_v22 = vpop.f32.mrf.mxu2 }
0x106f   :  { %v598_v23 = vadd.f32 %v595_v22, %v104_v21 }
0x1071   :  { %762 = vtanh.f32 %v598_v23  ;;  %v697_v25 = vmul.f32 -1.442695, %v598_v23 }
0x1073   :  { %764 = vpow2.f32 %v697_v25 }
0x1077   :  { %v763_v24 = vpop.eup %762 }
0x1078   :  { %621 = vrot.lane.b32.xlu1 %v763_v24, %s771_s11 }
0x1079   :  { %v765_v26 = vpop.eup %764 }
0x107a   :  { %v602_v27 = vadd.f32 1.0, %v765_v26 }
0x107c   :  { %766 = vrcp.f32 %v602_v27  ;;  %v614_v33 = vand.u32 2147483648, %v602_v27  ;;  %vm608_vm2 = vweird.f32 %v602_v27  ;;  %v612_v10 = vand.u32 2147483647, %v602_v27 }
0x107e   :  { %v615_v34 = vor.u32 1.1754944e-38, %v614_v33  ;;  %vm613_vm1 = vcmp.eq.f32.partialorder %v612_v10, 8.507059e+37 }
0x1082   :  { %v767_v28 = vpop.eup %766 }
0x1083   :  { %v604_v29 = vmul.f32 %v767_v28, %v602_v27  ;;  %vm609_vm0 = vweird.f32 %v767_v28 }
0x1084   :  { %vm610_vm3 = vmor %vm608_vm2, %vm609_vm0 }
0x1085   :  { %v605_v30 = vsub.f32 1.0, %v604_v29 }
0x1087   :  { %v606_v31 = vmul.f32 %v767_v28, %v605_v30 }
0x1089   :  { %v607_v32 = vadd.f32 %v767_v28, %v606_v31 }
0x108b   :  { %v611_v41 = vsel %vm610_vm3, %v767_v28, %v607_v32 }
0x108c   :  { %v616_v36 = vsel %vm613_vm1, %v615_v34, %v611_v41 }
0x108d   :  { %v619_v38 = vmul.f32 %v616_v36, %v564_v16 }
0x10ea   :  { %v622_v35 = vpop.permute.xlu1 %621 }
0x10eb   :  { %v624_v37 = vmul.f32 %v622_v35, %v616_v36 }
0x10ed   :  { %626 = vrot.lane.b32.xlu2 %v624_v37, %s772_s3 }
0x1147   :  { %v627_v39 = vpop.permute.xlu2 %626 }
0x1148   :  { %v629_v42 = vadd.f32 %v627_v39, %v619_v38 }
0x114a   :  { %768 = vtanh.f32 %v629_v42 }
0x1150   :  { %v769_v43 = vpop.eup %768 }
0x1151   :  { %632 = vrot.lane.b32.xlu0 %v769_v43, %s771_s11 }
0x11c3   :  { %v633_v47 = vpop.permute.xlu0 %632 }
0x11c4   :  { %v635_v48 = vmul.f32 %v633_v47, %v616_v36 }
0x11c6   :  { %645 = vrot.lane.b32.xlu1 %v635_v48, %s772_s3 }
0x1238   :  { %v646_v49 = vpop.permute.xlu1 %645 }
0x1239   :  { %698 = vmatmul.msk.f32.vlgmr.msra.gmra.mxu3 %vm119_vm6, %v646_v49 }
0x12bc   :  { %v666_v51 = vpop.f32.mrf.mxu3 }
0x12bd   :  { %v667_v52 = vadd.f32 %v705_v50, %v666_v51 }
0x12bf   :  { %669 = vst [vmem:[%s981_s6] sm:$0xff] %v667_v52 }

</bundles_post_ra>
